<compile_context>
chip_gen: v5e
topology: v5e:2x2
jax: 0.10.0
libtpu: 0.0.40
codegen_flags: <defaults>
</compile_context>

<pallas_src>
import functools

import jax
import jax.numpy as jnp
from jax import lax
from jax.experimental import pallas as pl
from jax.experimental.pallas import tpu as pltpu

# ---- LJParams defaults (deterministic, no checkpoint) -----------------------
EPSILON = 1.0
SIGMA = 1.0
RC = 3.0
E0 = 4.0 * EPSILON * ((SIGMA / RC) ** 12 - (SIGMA / RC) ** 6)
# TODO(synk): LJParams.smooth=True cutoff branch raises NotImplementedError in the torch
# reference; not implemented here either.

_STRIP = 8  # one sublane group of src rows kept register-resident per inner-loop step


def _lj_pair_kernel(fs_ref, fdT_ref, out_ref, *, n_atoms, sig2f, rc2f):
    """One (dst_block, src_block) tile of the dense minimal-image LJ pair graph.

    Works in fractional (cell-scaled) coordinates: sig2f=(sigma/cell)^2, rc2f=(rc/cell)^2.
    Accumulated rows: 0..2 = sum_src pf_frac (forces, scale 2/cell in wrapper),
    3 = sum pair_e (scale 0.5), 4..9 = sum pf_frac*f = pf_real (x) r_real (scale 0.5).
    """
    i = pl.program_id(0)          # dst block (parallel / megacore axis)
    j = pl.program_id(1)          # src block (reduction axis, output stays resident)
    t = fdT_ref.shape[1]
    n_strips = fs_ref.shape[0] // _STRIP

    @pl.when(j == 0)
    def _():
        out_ref[...] = jnp.zeros_like(out_ref)   # 16 x t block: trivial (few vreg stores)

    # dst-side quantities built once per grid step (loop-invariant).
    fdx = fdT_ref[0:1, :]                        # (1, t) fractional dst coords, lane-dense
    fdy = fdT_ref[1:2, :]
    fdz = fdT_ref[2:3, :]
    dst_idx = i * t + lax.broadcasted_iota(jnp.int32, (1, t), 1)
    dst_ok = dst_idx < n_atoms

    def strip(s, carry):
        afx, afy, afz, ae, axx, axy, axz, ayy, ayz, azz = carry
        row0 = pl.multiple_of(s * _STRIP, _STRIP)
        fsb = fs_ref[pl.ds(row0, _STRIP), :]     # (8, 3) fractional src coords

        # Minimal-image bond vectors in fractional coordinates.
        fx = fdx - fsb[:, 0:1]                   # (8, t)
        fy = fdy - fsb[:, 1:2]
        fz = fdz - fsb[:, 2:3]
        fx = fx - jnp.floor(fx + 0.5)
        fy = fy - jnp.floor(fy + 0.5)
        fz = fz - jnp.floor(fz + 0.5)
        r2 = fx * fx + fy * fy + fz * fz

        # 1-D iotas broadcast instead of two (t,t) int planes; keeps coincident-atom semantics.
        src_idx = j * t + row0 + lax.broadcasted_iota(jnp.int32, (_STRIP, 1), 0)
        valid = ((r2 < rc2f) & (src_idx != dst_idx)
                 & (src_idx < n_atoms) & dst_ok)
        m = valid.astype(jnp.float32)

        inv_r2 = pl.reciprocal(jnp.where(valid, r2, 1.0))   # one reciprocal, reused
        c6 = (sig2f * inv_r2) ** 3 * m                      # exactly 0 on masked pairs
        c12 = c6 * c6
        pair_e = 4.0 * EPSILON * (c12 - c6) - E0 * m
        coef = (12.0 * EPSILON) * (2.0 * c12 - c6) * inv_r2
        pfx = coef * fx
        pfy = coef * fy
        pfz = coef * fz

        return (afx + pfx, afy + pfy, afz + pfz, ae + pair_e,
                axx + pfx * fx, axy + pfx * fy, axz + pfx * fz,
                ayy + pfy * fy, ayz + pfy * fz, azz + pfz * fz)

    zero = jnp.zeros((_STRIP, t), jnp.float32)
    acc = lax.fori_loop(0, n_strips, strip, (zero,) * 10)

    # One sublane reduction per quantity per grid step, accumulated into the resident output.
    for row, plane in enumerate(acc):
        out_ref[row:row + 1, :] += jnp.sum(plane, axis=0, keepdims=True)


def lennard_jones_forward(positions, cell_length, *, tile=512):
    """LJ forward pass on the dense minimal-image periodic graph (cutoff RC)."""
    # TODO(synk): general periodic_radius_graph with multiple periodic images per pair is
    # graph-construction glue; only the minimal-image convention (valid for RC <= cell/2) is
    # implemented, in-kernel.
    n_atoms = positions.shape[0]
    cell = float(cell_length)

    # Tile: multiples of 128 lanes; cap at half the rounded atom count (when >= 256) so the
    # "parallel" dst axis always has >= 2 blocks for v7x megacore; default 512 per review.
    k = pl.cdiv(n_atoms, 128)
    m_cap = max(1, k // 2)
    t = 128 * max(1, min(tile // 128, m_cap))
    n_pad = pl.cdiv(k * 128, t) * t
    ni = n_pad // t                             # dst blocks (parallel)
    nj = n_pad // t                             # src blocks (reduction)

    pos = jnp.zeros((n_pad, 3), jnp.float32).at[:n_atoms].set(
        jnp.asarray(positions, jnp.float32))
    frac = pos * (1.0 / cell)                   # pre-scaled fractional coordinates
    frac_t = frac.T                             # (3, n_pad) lane-dense dst-side layout

    kernel = functools.partial(
        _lj_pair_kernel, n_atoms=n_atoms,
        sig2f=(SIGMA / cell) ** 2, rc2f=(RC / cell) ** 2)

    out = pl.pallas_call(
        kernel,
        out_shape=jax.ShapeDtypeStruct((16, n_pad), jnp.float32),
        grid=(ni, nj),
        in_specs=[
            pl.BlockSpec((t, 3), lambda i, j: (j, 0)),      # src fractional positions (rows)
            pl.BlockSpec((3, t), lambda i, j: (0, i)),      # dst fractional positions (transposed)
        ],
        out_specs=pl.BlockSpec((16, t), lambda i, j: (0, i)),
        compiler_params=pltpu.CompilerParams(
            dimension_semantics=("parallel", "arbitrary"),
            vmem_limit_bytes=48 * 1024 * 1024),             # explicit; safe on v5e/v6e/v7x
    )(frac, frac_t)

    # Constant scalings folded out of the kernel:
    #   pf_real = pf_frac / cell ; forces_i = 2 * sum_src pf (dense symmetric graph)
    #   energy  = 0.5 * sum_edges pair_e ; virial = 0.5 * sum_edges pf_real (x) r_real
    forces = out[0:3, :n_atoms].T * (2.0 / cell)
    energy = 0.5 * jnp.sum(out[3, :])
    v = 0.5 * jnp.sum(out[4:10, :], axis=1)
    virial = jnp.array([[v[0], v[1], v[2]],
                        [v[1], v[3], v[4]],
                        [v[2], v[4], v[5]]], dtype=jnp.float32)
    return dict(
        energy=energy,
        forces=forces,
        virial=virial,
        # On the dense symmetric minimal-image graph the dst-scattered analytic pair forces are
        # identical to the autograd forces (both equal 2 * sum_src pf), so no extra pass is run.
        analytic_force=forces,
    )


if __name__ == "__main__":
    key = jax.random.PRNGKey(0)
    n_atoms = 16
    cell_length = 6.0
    positions = jax.random.uniform(key, (n_atoms, 3), dtype=jnp.float32) * cell_length

    out = lennard_jones_forward(positions, cell_length)
    jax.block_until_ready(out)
    print("KERNEL_OK")
</pallas_src>

<mosaic_0001>
module attributes {stable_mosaic.version = 11 : i64} {
  func.func @_lj_pair_kernel(%arg0: i32, %arg1: i32, %arg2: memref<128x3xf32, #tpu.memory_space<vmem>>, %arg3: memref<3x128xf32, #tpu.memory_space<vmem>>, %arg4: memref<16x128xf32, #tpu.memory_space<vmem>>) attributes {dimension_semantics = [#tpu.dimension_semantics<parallel>, #tpu.dimension_semantics<arbitrary>], iteration_bounds = array<i64: 1, 1>, scalar_prefetch = 0 : i64, scratch_operands = 0 : i64, tpu.core_type = #tpu.core_type<tc>, window_params = [{transform_indices = @transform_0, window_bounds = array<i64: 128, 3>}, {transform_indices = @transform_1, window_bounds = array<i64: 3, 128>}, {transform_indices = @transform_2, window_bounds = array<i64: 16, 128>}]} {
    %c0_i32 = arith.constant 0 : i32
    %0 = arith.cmpi eq, %arg1, %c0_i32 : i32
    %1 = arith.extui %0 : i1 to i32
    %c0_i32_0 = arith.constant 0 : i32
    %2 = arith.cmpi ne, %1, %c0_i32_0 : i32
    scf.if %2 {
      %cst_50 = arith.constant 0.000000e+00 : f32
      %65 = vector.broadcast %cst_50 : f32 to vector<16x128xf32>
      %c0_51 = arith.constant 0 : index
      %c0_52 = arith.constant 0 : index
      %66 = vector.load %arg4[%c0_51, %c0_52] : memref<16x128xf32, #tpu.memory_space<vmem>>, vector<16x128xf32>
      tpu.vector_store %arg4[%c0_51, %c0_52], %65 {strides = array<i32>} : memref<16x128xf32, #tpu.memory_space<vmem>>, vector<16x128xf32>,
    } else {
    }
    %c0 = arith.constant 0 : index
    %c0_1 = arith.constant 0 : index
    %3 = vector.load %arg3[%c0, %c0_1] : memref<3x128xf32, #tpu.memory_space<vmem>>, vector<1x128xf32>
    %c1 = arith.constant 1 : index
    %c0_2 = arith.constant 0 : index
    %4 = vector.load %arg3[%c1, %c0_2] : memref<3x128xf32, #tpu.memory_space<vmem>>, vector<1x128xf32>
    %c2 = arith.constant 2 : index
    %c0_3 = arith.constant 0 : index
    %5 = vector.load %arg3[%c2, %c0_3] : memref<3x128xf32, #tpu.memory_space<vmem>>, vector<1x128xf32>
    %c128_i32 = arith.constant 128 : i32
    %6 = arith.muli %arg0, %c128_i32 : i32
    %7 = tpu.iota {dimensions = array<i32: 1>} : vector<1x128xi32>
    %8 = vector.broadcast %6 : i32 to vector<1x128xi32>
    %9 = arith.addi %8, %7 : vector<1x128xi32>
    %c16_i32 = arith.constant 16 : i32
    %10 = vector.broadcast %c16_i32 : i32 to vector<1x128xi32>
    %11 = arith.cmpi slt, %9, %10 : vector<1x128xi32>
    %cst = arith.constant 0.000000e+00 : f32
    %12 = vector.broadcast %cst : f32 to vector<8x128xf32>
    %c0_i32_4 = arith.constant 0 : i32
    %c16_i32_5 = arith.constant 16 : i32
    %13 = arith.addi %c0_i32_4, %c16_i32_5 : i32
    %c1_i32 = arith.constant 1 : i32
    %14:10 = scf.for %arg5 = %c0_i32_4 to %13 step %c1_i32 iter_args(%arg6 = %12, %arg7 = %12, %arg8 = %12, %arg9 = %12, %arg10 = %12, %arg11 = %12, %arg12 = %12, %arg13 = %12, %arg14 = %12, %arg15 = %12) -> (vector<8x128xf32>, vector<8x128xf32>, vector<8x128xf32>, vector<8x128xf32>, vector<8x128xf32>, vector<8x128xf32>, vector<8x128xf32>, vector<8x128xf32>, vector<8x128xf32>, vector<8x128xf32>)  : i32 {
      %c8_i32 = arith.constant 8 : i32
      %65 = arith.muli %arg5, %c8_i32 : i32
      %66 = tpu.assume_multiple %65, 8 : i32
      %67 = arith.index_cast %66 : i32 to index
      %c0_50 = arith.constant 0 : index
      %68 = vector.load %arg2[%67, %c0_50] : memref<128x3xf32, #tpu.memory_space<vmem>>, vector<8x3xf32>
      %69 = vector.extract_strided_slice %68 {offsets = [0, 0], sizes = [8, 1], strides = [1, 1]} : vector<8x3xf32> to vector<8x1xf32>
      %70 = vector.broadcast %3 : vector<1x128xf32> to vector<8x128xf32>
      %71 = vector.broadcast %69 : vector<8x1xf32> to vector<8x128xf32>
      %72 = arith.subf %70, %71 : vector<8x128xf32>
      %73 = vector.extract_strided_slice %68 {offsets = [0, 1], sizes = [8, 1], strides = [1, 1]} : vector<8x3xf32> to vector<8x1xf32>
      %74 = vector.broadcast %4 : vector<1x128xf32> to vector<8x128xf32>
      %75 = vector.broadcast %73 : vector<8x1xf32> to vector<8x128xf32>
      %76 = arith.subf %74, %75 : vector<8x128xf32>
      %77 = vector.extract_strided_slice %68 {offsets = [0, 2], sizes = [8, 1], strides = [1, 1]} : vector<8x3xf32> to vector<8x1xf32>
      %78 = vector.broadcast %5 : vector<1x128xf32> to vector<8x128xf32>
      %79 = vector.broadcast %77 : vector<8x1xf32> to vector<8x128xf32>
      %80 = arith.subf %78, %79 : vector<8x128xf32>
      %cst_51 = arith.constant 5.000000e-01 : f32
      %81 = vector.broadcast %cst_51 : f32 to vector<8x128xf32>
      %82 = arith.addf %72, %81 : vector<8x128xf32>
      %83 = math.floor %82 : vector<8x128xf32>
      %84 = arith.subf %72, %83 : vector<8x128xf32>
      %cst_52 = arith.constant 5.000000e-01 : f32
      %85 = vector.broadcast %cst_52 : f32 to vector<8x128xf32>
      %86 = arith.addf %76, %85 : vector<8x128xf32>
      %87 = math.floor %86 : vector<8x128xf32>
      %88 = arith.subf %76, %87 : vector<8x128xf32>
      %cst_53 = arith.constant 5.000000e-01 : f32
      %89 = vector.broadcast %cst_53 : f32 to vector<8x128xf32>
      %90 = arith.addf %80, %89 : vector<8x128xf32>
      %91 = math.floor %90 : vector<8x128xf32>
      %92 = arith.subf %80, %91 : vector<8x128xf32>
      %93 = arith.mulf %84, %84 : vector<8x128xf32>
      %94 = arith.mulf %88, %88 : vector<8x128xf32>
      %95 = arith.addf %93, %94 : vector<8x128xf32>
      %96 = arith.mulf %92, %92 : vector<8x128xf32>
      %97 = arith.addf %95, %96 : vector<8x128xf32>
      %c128_i32_54 = arith.constant 128 : i32
      %98 = arith.muli %arg1, %c128_i32_54 : i32
      %99 = arith.addi %98, %66 : i32
      %100 = tpu.iota {dimensions = array<i32: 0>} : vector<8x1xi32>
      %101 = vector.broadcast %99 : i32 to vector<8x1xi32>
      %102 = arith.addi %101, %100 : vector<8x1xi32>
      %cst_55 = arith.constant 2.500000e-01 : f32
      %103 = vector.broadcast %cst_55 : f32 to vector<8x128xf32>
      %104 = arith.cmpf olt, %97, %103 : vector<8x128xf32>
      %105 = vector.broadcast %102 : vector<8x1xi32> to vector<8x128xi32>
      %106 = vector.broadcast %9 : vector<1x128xi32> to vector<8x128xi32>
      %107 = arith.cmpi ne, %105, %106 : vector<8x128xi32>
      %108 = arith.andi %104, %107 : vector<8x128xi1>
      %c16_i32_56 = arith.constant 16 : i32
      %109 = vector.broadcast %c16_i32_56 : i32 to vector<8x1xi32>
      %110 = arith.cmpi slt, %102, %109 : vector<8x1xi32>
      %111 = vector.broadcast %110 : vector<8x1xi1> to vector<8x128xi1>
      %112 = arith.andi %108, %111 : vector<8x128xi1>
      %113 = vector.broadcast %11 : vector<1x128xi1> to vector<8x128xi1>
      %114 = arith.andi %112, %113 : vector<8x128xi1>
      %115 = arith.extui %114 : vector<8x128xi1> to vector<8x128xi32>
      %116 = arith.sitofp %115 : vector<8x128xi32> to vector<8x128xf32>
      %cst_57 = arith.constant 1.000000e+00 : f32
      %117 = vector.broadcast %cst_57 : f32 to vector<8x128xf32>
      %118 = arith.select %114, %97, %117 : vector<8x128xi1>, vector<8x128xf32>
      %119 = tpu.reciprocal %118 : vector<8x128xf32> -> vector<8x128xf32>
      %cst_58 = arith.constant 0.027777778 : f32
      %120 = vector.broadcast %cst_58 : f32 to vector<8x128xf32>
      %121 = arith.mulf %120, %119 : vector<8x128xf32>
      %122 = arith.mulf %121, %121 : vector<8x128xf32>
      %123 = arith.mulf %121, %122 : vector<8x128xf32>
      %124 = arith.mulf %123, %116 : vector<8x128xf32>
      %125 = arith.mulf %124, %124 : vector<8x128xf32>
      %126 = arith.subf %125, %124 : vector<8x128xf32>
      %cst_59 = arith.constant 4.000000e+00 : f32
      %127 = vector.broadcast %cst_59 : f32 to vector<8x128xf32>
      %128 = arith.mulf %127, %126 : vector<8x128xf32>
      %cst_60 = arith.constant -0.00547944196 : f32
      %129 = vector.broadcast %cst_60 : f32 to vector<8x128xf32>
      %130 = arith.mulf %129, %116 : vector<8x128xf32>
      %131 = arith.subf %128, %130 : vector<8x128xf32>
      %cst_61 = arith.constant 2.000000e+00 : f32
      %132 = vector.broadcast %cst_61 : f32 to vector<8x128xf32>
      %133 = arith.mulf %132, %125 : vector<8x128xf32>
      %134 = arith.subf %133, %124 : vector<8x128xf32>
      %cst_62 = arith.constant 1.200000e+01 : f32
      %135 = vector.broadcast %cst_62 : f32 to vector<8x128xf32>
      %136 = arith.mulf %135, %134 : vector<8x128xf32>
      %137 = arith.mulf %136, %119 : vector<8x128xf32>
      %138 = arith.mulf %137, %84 : vector<8x128xf32>
      %139 = arith.mulf %137, %88 : vector<8x128xf32>
      %140 = arith.mulf %137, %92 : vector<8x128xf32>
      %141 = arith.addf %arg6, %138 : vector<8x128xf32>
      %142 = arith.addf %arg7, %139 : vector<8x128xf32>
      %143 = arith.addf %arg8, %140 : vector<8x128xf32>
      %144 = arith.addf %arg9, %131 : vector<8x128xf32>
      %145 = arith.mulf %138, %84 : vector<8x128xf32>
      %146 = arith.addf %arg10, %145 : vector<8x128xf32>
      %147 = arith.mulf %138, %88 : vector<8x128xf32>
      %148 = arith.addf %arg11, %147 : vector<8x128xf32>
      %149 = arith.mulf %138, %92 : vector<8x128xf32>
      %150 = arith.addf %arg12, %149 : vector<8x128xf32>
      %151 = arith.mulf %139, %88 : vector<8x128xf32>
      %152 = arith.addf %arg13, %151 : vector<8x128xf32>
      %153 = arith.mulf %139, %92 : vector<8x128xf32>
      %154 = arith.addf %arg14, %153 : vector<8x128xf32>
      %155 = arith.mulf %140, %92 : vector<8x128xf32>
      %156 = arith.addf %arg15, %155 : vector<8x128xf32>
      scf.yield %141, %142, %143, %144, %146, %148, %150, %152, %154, %156 : vector<8x128xf32>, vector<8x128xf32>, vector<8x128xf32>, vector<8x128xf32>, vector<8x128xf32>, vector<8x128xf32>, vector<8x128xf32>, vector<8x128xf32>, vector<8x128xf32>, vector<8x128xf32>
    }
    %c16_i32_6 = arith.constant 16 : i32
    %c0_7 = arith.constant 0 : index
    %c0_8 = arith.constant 0 : index
    %15 = vector.load %arg4[%c0_7, %c0_8] : memref<16x128xf32, #tpu.memory_space<vmem>>, vector<1x128xf32>
    %cst_9 = arith.constant dense<0.000000e+00> : vector<128xf32>
    %16 = vector.multi_reduction <add>, %14#0, %cst_9 [0] : vector<8x128xf32> to vector<128xf32>
    %17 = vector.shape_cast %16 : vector<128xf32> to vector<1x128xf32>
    %18 = arith.addf %15, %17 : vector<1x128xf32>
    %c0_10 = arith.constant 0 : index
    %c0_11 = arith.constant 0 : index
    %19 = vector.load %arg4[%c0_10, %c0_11] : memref<16x128xf32, #tpu.memory_space<vmem>>, vector<1x128xf32>
    tpu.vector_store %arg4[%c0_10, %c0_11], %18 {strides = array<i32>} : memref<16x128xf32, #tpu.memory_space<vmem>>, vector<1x128xf32>,
    %c1_12 = arith.constant 1 : index
    %c0_13 = arith.constant 0 : index
    %20 = vector.load %arg4[%c1_12, %c0_13] : memref<16x128xf32, #tpu.memory_space<vmem>>, vector<1x128xf32>
    %cst_14 = arith.constant dense<0.000000e+00> : vector<128xf32>
    %21 = vector.multi_reduction <add>, %14#1, %cst_14 [0] : vector<8x128xf32> to vector<128xf32>
    %22 = vector.shape_cast %21 : vector<128xf32> to vector<1x128xf32>
    %23 = arith.addf %20, %22 : vector<1x128xf32>
    %c1_15 = arith.constant 1 : index
    %c0_16 = arith.constant 0 : index
    %24 = vector.load %arg4[%c1_15, %c0_16] : memref<16x128xf32, #tpu.memory_space<vmem>>, vector<1x128xf32>
    tpu.vector_store %arg4[%c1_15, %c0_16], %23 {strides = array<i32>} : memref<16x128xf32, #tpu.memory_space<vmem>>, vector<1x128xf32>,
    %c2_17 = arith.constant 2 : index
    %c0_18 = arith.constant 0 : index
    %25 = vector.load %arg4[%c2_17, %c0_18] : memref<16x128xf32, #tpu.memory_space<vmem>>, vector<1x128xf32>
    %cst_19 = arith.constant dense<0.000000e+00> : vector<128xf32>
    %26 = vector.multi_reduction <add>, %14#2, %cst_19 [0] : vector<8x128xf32> to vector<128xf32>
    %27 = vector.shape_cast %26 : vector<128xf32> to vector<1x128xf32>
    %28 = arith.addf %25, %27 : vector<1x128xf32>
    %c2_20 = arith.constant 2 : index
    %c0_21 = arith.constant 0 : index
    %29 = vector.load %arg4[%c2_20, %c0_21] : memref<16x128xf32, #tpu.memory_space<vmem>>, vector<1x128xf32>
    tpu.vector_store %arg4[%c2_20, %c0_21], %28 {strides = array<i32>} : memref<16x128xf32, #tpu.memory_space<vmem>>, vector<1x128xf32>,
    %c3 = arith.constant 3 : index
    %c0_22 = arith.constant 0 : index
    %30 = vector.load %arg4[%c3, %c0_22] : memref<16x128xf32, #tpu.memory_space<vmem>>, vector<1x128xf32>
    %cst_23 = arith.constant dense<0.000000e+00> : vector<128xf32>
    %31 = vector.multi_reduction <add>, %14#3, %cst_23 [0] : vector<8x128xf32> to vector<128xf32>
    %32 = vector.shape_cast %31 : vector<128xf32> to vector<1x128xf32>
    %33 = arith.addf %30, %32 : vector<1x128xf32>
    %c3_24 = arith.constant 3 : index
    %c0_25 = arith.constant 0 : index
    %34 = vector.load %arg4[%c3_24, %c0_25] : memref<16x128xf32, #tpu.memory_space<vmem>>, vector<1x128xf32>
    tpu.vector_store %arg4[%c3_24, %c0_25], %33 {strides = array<i32>} : memref<16x128xf32, #tpu.memory_space<vmem>>, vector<1x128xf32>,
    %c4 = arith.constant 4 : index
    %c0_26 = arith.constant 0 : index
    %35 = vector.load %arg4[%c4, %c0_26] : memref<16x128xf32, #tpu.memory_space<vmem>>, vector<1x128xf32>
    %cst_27 = arith.constant dense<0.000000e+00> : vector<128xf32>
    %36 = vector.multi_reduction <add>, %14#4, %cst_27 [0] : vector<8x128xf32> to vector<128xf32>
    %37 = vector.shape_cast %36 : vector<128xf32> to vector<1x128xf32>
    %38 = arith.addf %35, %37 : vector<1x128xf32>
    %c4_28 = arith.constant 4 : index
    %c0_29 = arith.constant 0 : index
    %39 = vector.load %arg4[%c4_28, %c0_29] : memref<16x128xf32, #tpu.memory_space<vmem>>, vector<1x128xf32>
    tpu.vector_store %arg4[%c4_28, %c0_29], %38 {strides = array<i32>} : memref<16x128xf32, #tpu.memory_space<vmem>>, vector<1x128xf32>,
    %c5 = arith.constant 5 : index
    %c0_30 = arith.constant 0 : index
    %40 = vector.load %arg4[%c5, %c0_30] : memref<16x128xf32, #tpu.memory_space<vmem>>, vector<1x128xf32>
    %cst_31 = arith.constant dense<0.000000e+00> : vector<128xf32>
    %41 = vector.multi_reduction <add>, %14#5, %cst_31 [0] : vector<8x128xf32> to vector<128xf32>
    %42 = vector.shape_cast %41 : vector<128xf32> to vector<1x128xf32>
    %43 = arith.addf %40, %42 : vector<1x128xf32>
    %c5_32 = arith.constant 5 : index
    %c0_33 = arith.constant 0 : index
    %44 = vector.load %arg4[%c5_32, %c0_33] : memref<16x128xf32, #tpu.memory_space<vmem>>, vector<1x128xf32>
    tpu.vector_store %arg4[%c5_32, %c0_33], %43 {strides = array<i32>} : memref<16x128xf32, #tpu.memory_space<vmem>>, vector<1x128xf32>,
    %c6 = arith.constant 6 : index
    %c0_34 = arith.constant 0 : index
    %45 = vector.load %arg4[%c6, %c0_34] : memref<16x128xf32, #tpu.memory_space<vmem>>, vector<1x128xf32>
    %cst_35 = arith.constant dense<0.000000e+00> : vector<128xf32>
    %46 = vector.multi_reduction <add>, %14#6, %cst_35 [0] : vector<8x128xf32> to vector<128xf32>
    %47 = vector.shape_cast %46 : vector<128xf32> to vector<1x128xf32>
    %48 = arith.addf %45, %47 : vector<1x128xf32>
    %c6_36 = arith.constant 6 : index
    %c0_37 = arith.constant 0 : index
    %49 = vector.load %arg4[%c6_36, %c0_37] : memref<16x128xf32, #tpu.memory_space<vmem>>, vector<1x128xf32>
    tpu.vector_store %arg4[%c6_36, %c0_37], %48 {strides = array<i32>} : memref<16x128xf32, #tpu.memory_space<vmem>>, vector<1x128xf32>,
    %c7 = arith.constant 7 : index
    %c0_38 = arith.constant 0 : index
    %50 = vector.load %arg4[%c7, %c0_38] : memref<16x128xf32, #tpu.memory_space<vmem>>, vector<1x128xf32>
    %cst_39 = arith.constant dense<0.000000e+00> : vector<128xf32>
    %51 = vector.multi_reduction <add>, %14#7, %cst_39 [0] : vector<8x128xf32> to vector<128xf32>
    %52 = vector.shape_cast %51 : vector<128xf32> to vector<1x128xf32>
    %53 = arith.addf %50, %52 : vector<1x128xf32>
    %c7_40 = arith.constant 7 : index
    %c0_41 = arith.constant 0 : index
    %54 = vector.load %arg4[%c7_40, %c0_41] : memref<16x128xf32, #tpu.memory_space<vmem>>, vector<1x128xf32>
    tpu.vector_store %arg4[%c7_40, %c0_41], %53 {strides = array<i32>} : memref<16x128xf32, #tpu.memory_space<vmem>>, vector<1x128xf32>,
    %c8 = arith.constant 8 : index
    %c0_42 = arith.constant 0 : index
    %55 = vector.load %arg4[%c8, %c0_42] : memref<16x128xf32, #tpu.memory_space<vmem>>, vector<1x128xf32>
    %cst_43 = arith.constant dense<0.000000e+00> : vector<128xf32>
    %56 = vector.multi_reduction <add>, %14#8, %cst_43 [0] : vector<8x128xf32> to vector<128xf32>
    %57 = vector.shape_cast %56 : vector<128xf32> to vector<1x128xf32>
    %58 = arith.addf %55, %57 : vector<1x128xf32>
    %c8_44 = arith.constant 8 : index
    %c0_45 = arith.constant 0 : index
    %59 = vector.load %arg4[%c8_44, %c0_45] : memref<16x128xf32, #tpu.memory_space<vmem>>, vector<1x128xf32>
    tpu.vector_store %arg4[%c8_44, %c0_45], %58 {strides = array<i32>} : memref<16x128xf32, #tpu.memory_space<vmem>>, vector<1x128xf32>,
    %c9 = arith.constant 9 : index
    %c0_46 = arith.constant 0 : index
    %60 = vector.load %arg4[%c9, %c0_46] : memref<16x128xf32, #tpu.memory_space<vmem>>, vector<1x128xf32>
    %cst_47 = arith.constant dense<0.000000e+00> : vector<128xf32>
    %61 = vector.multi_reduction <add>, %14#9, %cst_47 [0] : vector<8x128xf32> to vector<128xf32>
    %62 = vector.shape_cast %61 : vector<128xf32> to vector<1x128xf32>
    %63 = arith.addf %60, %62 : vector<1x128xf32>
    %c9_48 = arith.constant 9 : index
    %c0_49 = arith.constant 0 : index
    %64 = vector.load %arg4[%c9_48, %c0_49] : memref<16x128xf32, #tpu.memory_space<vmem>>, vector<1x128xf32>
    tpu.vector_store %arg4[%c9_48, %c0_49], %63 {strides = array<i32>} : memref<16x128xf32, #tpu.memory_space<vmem>>, vector<1x128xf32>,
    return
  }
  func.func @transform_0(%arg0: i32, %arg1: i32) -> (i32, i32) {
    %c0_i32 = arith.constant 0 : i32
    %c0_i32_0 = arith.constant 0 : i32
    return %arg1, %c0_i32 : i32, i32
  }
  func.func @transform_1(%arg0: i32, %arg1: i32) -> (i32, i32) {
    %c0_i32 = arith.constant 0 : i32
    %c0_i32_0 = arith.constant 0 : i32
    return %c0_i32, %arg0 : i32, i32
  }
  func.func @transform_2(%arg0: i32, %arg1: i32) -> (i32, i32) {
    %c0_i32 = arith.constant 0 : i32
    %c0_i32_0 = arith.constant 0 : i32
    return %c0_i32, %arg0 : i32, i32
  }
}

</mosaic_0001>

<bundles_post_ra>
// kernel: tpu_custom_call.1
= control target key start
LH: loop header
LB: loop body
LE: loop exit
PB: predicated region body
PF: predicated region fallthrough
CT: control target
= control target key end

     0   :  { %7 = vsyncpa [#allocation3], 0  ;;  %v22_v1 = vlaneseq  ;;  %v507_v2 = vmov 0.0   ;;  %v549_v6 = vmov 0.0   ;;  %v551_v7 = vmov 0.0   ;;  %s669_s0 = inlined_call_operand.vmem [shape: f32[128,3], index: 0, kind: input, shape index: {}]   ;;  %s670_s1 = inlined_call_operand.vmem [shape: f32[3,128], index: 1, kind: input, shape index: {}]   ;;  %s671_s2 = inlined_call_operand.hbm [shape: f32[16,128], index: 2, kind: output, shape index: {}]  }
   0x1   :  { %v533_v0 = vld [vmem:[%s670_s1] sm:$0x1]  ;;  %16 = vst [vmem:[#allocation2] sm:$0xff] %v507_v2  ;;  %v538_v3 = vld [vmem:[%s670_s1 + $0x1] sm:$0x1]  ;;  %v553_v8 = vmov 0.0  }
   0x2   :  { %v543_v4 = vld [vmem:[%s670_s1 + $0x2] sm:$0x1]  ;;  %17 = vst [vmem:[#allocation2 + $0x8] sm:$0xff] %v507_v2  ;;  %v546_v5 = vand.u32 127, %v22_v1  ;;  %v555_v9 = vmov 0.0   ;;  %v557_v10 = vmov 0.0  }
   0x3   :  { %v559_v11 = vmov 0.0   ;;  %v561_v12 = vmov 0.0   ;;  %v563_v13 = vmov 0.0   ;;  %v565_v14 = vmov 0.0   ;;  %s569_s1 = smov 0  }
   0x4   :  { %vm26_vm0 = vcmp.lt.s32.totalorder %v546_v5, 16  ;;  %v567_v15 = vmov 0.0  }
   0x5 LB: > { %v508_v16 = vmov 0   ;;  %v509_v17 = vmov 2   ;;  %s289_s15 = sshll.u32 %s505_s1, 3  ;;  %v510_v19 = vmov 1   ;;  %v46_v20 = vperm.slane %v533_v0, 0  ;;  %s32_s1 = sadd.s32 1, %s505_s1   ;;  %s505_s1 = sphi %s569_s1, %s32_s1   ;;  %v501_v15 = vphi %v567_v15, %v685_v15   ;;  %v497_v14 = vphi %v565_v14, %v684_v14   ;;  %v493_v13 = vphi %v563_v13, %v683_v13   ;;  %v489_v12 = vphi %v561_v12, %v682_v12   ;;  %v485_v11 = vphi %v559_v11, %v681_v11   ;;  %v481_v10 = vphi %v557_v10, %v680_v10   ;;  %v477_v9 = vphi %v555_v9, %v679_v9   ;;  %v473_v8 = vphi %v553_v8, %v678_v8   ;;  %v469_v7 = vphi %v551_v7, %v677_v7   ;;  %v465_v6 = vphi %v549_v6, %v676_v6  }
   0x6   : > { %387 = vset.pattern.permute.xlu0 %v508_v16  ;;  %389 = vset.pattern.permute.xlu1 %v509_v17  ;;  %s44_s18 = scalar_lea.vmem %s669_s0, %s289_s15  ;;  %v59_v22 = vperm.slane %v543_v4, 0  ;;  %v53_v27 = vperm.slane %v538_v3, 0  ;;  %v82_v34 = vshrl.u32 %v22_v1, 7  ;;  %v83_v37 = vstv %s289_s15  ;;  %p29_p0 = scmp.ge.s32.totalorder %s32_s1, 16  }
   0x7   : > { %v45_v18 = vld [vmem:[%s44_s18] sm:$0xff]  ;;  %v511_v61 = vmov 0.0   ;;  %s512_s0 = smov (%p29_p0), [#allocation2]   ;;  %s240_s22 = sshll.u32 (%p29_p0), %s671_s2, 4  ;;  %s241_s22 = int_to_ptr.hbm [resolvable:$true] %s240_s22 }
   0x8   : > { %49 = vperm.xlu0 %387, %v45_v18   ;;  %61 = vperm.xlu1 %389, %v45_v18   ;;  %v84_v40 = vadd.s32 %v83_v37, %v82_v34  ;;  %s238_s19 = sshll.u32 (%p29_p0), %s512_s0, 4  ;;  %s513_s23 = smov (%p29_p0), 128   ;;  %s239_s19 = int_to_ptr.vmem [resolvable:$true] %s238_s19 }
   0x9   :  { %s514_s24 = smov (%p29_p0), 8  }
   0xa   : > { %vm86_vm1 = vcmp.ne.s32.totalorder %v84_v40, %v546_v5  ;;  %vm88_vm2 = vcmp.lt.s32.totalorder %v84_v40, 16 }
  0x10   : > { %388 = vset.pattern.permute.xlu0 %v510_v19 }
  0x11   : > { %55 = vperm.xlu0 %388, %v45_v18  }
  0x19   : > { %390 = vset.pattern.permute.xlu0 %v509_v17 }
  0x7a   : > { %v50_v21 = vpop.permute.xlu0 %49  ;;  %v62_v23 = vpop.permute.xlu1 %61 }
  0x7b   : > { %v52_v24 = vsub.f32 %v46_v20, %v50_v21  ;;  %v64_v25 = vsub.f32 %v59_v22, %v62_v23 }
  0x7d   : > { %v65_v26 = vadd.f32 0.5, %v52_v24  ;;  %v71_v28 = vadd.f32 0.5, %v64_v25 }
  0x7f   : > { %v66_v30 = vfloor.f32 %v65_v26  ;;  %v72_v32 = vfloor.f32 %v71_v28 }
  0x81   : > { %v67_v35 = vsub.f32 %v52_v24, %v66_v30  ;;  %v73_v38 = vsub.f32 %v64_v25, %v72_v32 }
  0x83   : > { %v56_v29 = vpop.permute.xlu0 %55  ;;  %v74_v41 = vmul.f32 %v67_v35, %v67_v35  ;;  %v77_v43 = vmul.f32 %v73_v38, %v73_v38 }
  0x84   : > { %v58_v31 = vsub.f32 %v53_v27, %v56_v29 }
  0x86   : > { %v68_v33 = vadd.f32 0.5, %v58_v31 }
  0x88   : > { %v69_v36 = vfloor.f32 %v68_v33 }
  0x8a   : > { %v70_v39 = vsub.f32 %v58_v31, %v69_v36 }
  0x8c   : > { %v75_v42 = vmul.f32 %v70_v39, %v70_v39 }
  0x8e   : > { %v76_v44 = vadd.f32 %v75_v42, %v74_v41 }
  0x90   : > { %v78_v45 = vadd.f32 %v77_v43, %v76_v44 }
  0x92   : > { %vm85_vm3 = vcmp.lt.f32.partialorder %v78_v45, 0.25 }
  0x93   : > { %vm87_vm4 = vmand %vm85_vm3, %vm86_vm1 }
  0x94   : > { %vm91_vm5 = vmand %vm87_vm4, %vm88_vm2 }
  0x95   : > { %vm615_vm6 = vmand %vm91_vm5, %vm26_vm0 }
  0x96   : > { %v97_v47 = vsel %vm615_vm6, %v78_v45, 1.0  ;;  %v290_v62 = vsel %vm615_vm6, 1.0, %v511_v61 }
  0x97   : > { %391 = vrcp.f32 %v97_v47  ;;  %v109_v51 = vand.u32 2147483648, %v97_v47  ;;  %v107_v53 = vand.u32 2147483647, %v97_v47  ;;  %vm103_vm8 = vweird.f32 %v97_v47 }
  0x98   : > { %v119_v19 = vmul.f32 -0.005479442, %v290_v62 }
  0x99   : > { %v110_v55 = vor.u32 1.1754944e-38, %v109_v51  ;;  %vm108_vm10 = vcmp.eq.f32.partialorder %v107_v53, 8.507059e+37 }
  0x9d   : > { %v392_v48 = vpop.eup %391 }
  0x9e   : > { %v99_v49 = vmul.f32 %v392_v48, %v97_v47  ;;  %vm104_vm7 = vweird.f32 %v392_v48 }
  0x9f   : > { %vm105_vm9 = vmor %vm103_vm8, %vm104_vm7 }
  0xa0   : > { %v100_v50 = vsub.f32 1.0, %v99_v49 }
  0xa2   : > { %v101_v52 = vmul.f32 %v392_v48, %v100_v50 }
  0xa4   : > { %v102_v54 = vadd.f32 %v392_v48, %v101_v52 }
  0xa6   : > { %v106_v56 = vsel %vm105_vm9, %v392_v48, %v102_v54 }
  0xa7   : > { %v111_v57 = vsel %vm108_vm10, %v110_v55, %v106_v56 }
  0xa8   : > { %v112_v58 = vmul.f32 0.027777778, %v111_v57 }
  0xaa   : > { %v113_v59 = vmul.f32 %v112_v58, %v112_v58 }
  0xac   : > { %v114_v60 = vmul.f32 %v113_v59, %v112_v58 }
  0xae   : > { %v115_v63 = vmul.f32 %v290_v62, %v114_v60 }
  0xb0   : > { %v116_v2 = vmul.f32 %v115_v63, %v115_v63 }
  0xb2   : > { %v117_v16 = vsub.f32 %v116_v2, %v115_v63  ;;  %v121_v17 = vmul.f32 2.0, %v116_v2 }
  0xb4   : > { %v118_v18 = vmul.f32 4.0, %v117_v16  ;;  %v122_v20 = vsub.f32 %v121_v17, %v115_v63 }
  0xb6   : > { %v120_v21 = vsub.f32 %v118_v18, %v119_v19  ;;  %v123_v22 = vmul.f32 12.0, %v122_v20  ;;  %v162_v19 = vld [vmem:[#allocation2 + $0x2] sm:$0x1] (%p29_p0)  ;;  %v171_v20 = vld [vmem:[#allocation2 + $0x3] sm:$0x1] (%p29_p0) }
  0xb8   : > { %v124_v23 = vmul.f32 %v123_v22, %v111_v57  ;;  %v131_v24 = vadd.f32 %v489_v12, %v120_v21  }
  0xba   : > { %v125_v25 = vmul.f32 %v124_v23, %v67_v35  ;;  %v126_v26 = vmul.f32 %v124_v23, %v70_v39  ;;  %v127_v27 = vmul.f32 %v124_v23, %v73_v38  ;;  %v682_v12 = vmov %v131_v24 }
  0xbc   : > { %v128_v28 = vadd.f32 %v501_v15, %v125_v25   ;;  %v129_v29 = vadd.f32 %v497_v14, %v126_v26   ;;  %v130_v30 = vadd.f32 %v493_v13, %v127_v27   ;;  %v132_v31 = vmul.f32 %v125_v25, %v67_v35 }
  0xbd   : > { %v134_v32 = vmul.f32 %v125_v25, %v70_v39  ;;  %v136_v33 = vmul.f32 %v125_v25, %v73_v38  ;;  %v138_v34 = vmul.f32 %v126_v26, %v70_v39  ;;  %v140_v36 = vmul.f32 %v126_v26, %v73_v38  ;;  %v180_v25 = vld [vmem:[#allocation2 + $0x4] sm:$0x1] (%p29_p0) }
  0xbe   : > { %v133_v37 = vadd.f32 %v485_v11, %v132_v31   ;;  %v142_v40 = vmul.f32 %v127_v27, %v73_v38  ;;  %v683_v13 = vmov %v130_v30  ;;  %v684_v14 = vmov %v129_v29  ;;  %v189_v31 = vld [vmem:[#allocation2 + $0x5] sm:$0x1] (%p29_p0) }
  0xbf   : > { %v135_v41 = vadd.f32 %v481_v10, %v134_v32   ;;  %v137_v42 = vadd.f32 %v477_v9, %v136_v33   ;;  %v139_v43 = vadd.f32 %v473_v8, %v138_v34   ;;  %v632_v7 = vadd.f32 %v469_v7, %v140_v36   ;;  %31 = sbr.rel (!%p29_p0) target bundleno = 5 (0x5), region = 40  ;;  %v144_v13 = vld [vmem:[#allocation2] sm:$0x1] (%p29_p0)  ;;  %v153_v14 = vld [vmem:[#allocation2 + $0x1] sm:$0x1] (%p29_p0) }
  0xc0   : > { %v635_v6 = vadd.f32 %v465_v6, %v142_v40   ;;  %v681_v11 = vmov %v133_v37  ;;  %v685_v15 = vmov %v128_v28  ;;  %v154_v35 = vrot.slane (%p29_p0), %v129_v29, 4  ;;  %v198_v36 = vld [vmem:[#allocation2 + $0x6] sm:$0x1] (%p29_p0) }
  0xc1   : > { %v674_v44 = vmov %v632_v7  ;;  %v678_v8 = vmov %v139_v43  ;;  %v679_v9 = vmov %v137_v42  ;;  %v680_v10 = vmov %v135_v41 }
  0xc2   : > { %v675_v45 = vmov %v635_v6  ;;  %v677_v7 = vmov %v674_v44  ;;  %v145_v15 = vrot.slane (%p29_p0), %v128_v28, 4  ;;  %v163_v38 = vrot.slane (%p29_p0), %v130_v30, 4 }
  0xc3   : > { %v676_v6 = vmov %v675_v45  ;;  %v172_v39 = vrot.slane (%p29_p0), %v131_v24, 4  ;;  %v155_v47 = vadd.f32 (%p29_p0), %v154_v35, %v129_v29  ;;  %v181_v48 = vrot.slane (%p29_p0), %v133_v37, 4 }
  0xc4   :  { %v146_v46 = vadd.f32 %v145_v15, %v128_v28  ;;  %v190_v49 = vrot.slane %v135_v41, 4  ;;  %v164_v50 = vadd.f32 %v163_v38, %v130_v30  ;;  %v199_v52 = vrot.slane %v137_v42, 4 }
  0xc5   :  { %v173_v51 = vadd.f32 %v172_v39, %v131_v24  ;;  %v208_v53 = vrot.slane %v139_v43, 4  ;;  %v156_v55 = vrot.slane %v155_v47, 2  ;;  %v182_v56 = vadd.f32 %v181_v48, %v133_v37 }
  0xc6   :  { %v147_v54 = vrot.slane %v146_v46, 2  ;;  %v191_v57 = vadd.f32 %v190_v49, %v135_v41  ;;  %v165_v58 = vrot.slane %v164_v50, 2  ;;  %v200_v60 = vadd.f32 %v199_v52, %v137_v42  ;;  %v207_v42 = vld [vmem:[#allocation2 + $0x7] sm:$0x1] }
  0xc7   :  { %v174_v59 = vrot.slane %v173_v51, 2  ;;  %v209_v61 = vadd.f32 %v208_v53, %v139_v43  ;;  %v157_v1 = vadd.f32 %v156_v55, %v155_v47  ;;  %v183_v3 = vrot.slane %v182_v56, 2  ;;  %v225_v55 = vld [vmem:[#allocation2 + $0x9] sm:$0x1] }
  0xc8   :  { %v148_v0 = vadd.f32 %v147_v54, %v146_v46  ;;  %v192_v4 = vrot.slane %v191_v57, 2  ;;  %v166_v5 = vadd.f32 %v165_v58, %v164_v50  ;;  %v201_v7 = vrot.slane %v200_v60, 2  ;;  %v216_v54 = vld [vmem:[#allocation2 + $0x8] sm:$0x1] }
  0xc9   :  { %v175_v6 = vadd.f32 %v174_v59, %v173_v51  ;;  %v210_v8 = vrot.slane %v209_v61, 2  ;;  %v158_v10 = vrot.slane %v157_v1, 1  ;;  %v184_v11 = vadd.f32 %v183_v3, %v182_v56 }
  0xca   :  { %v149_v9 = vrot.slane %v148_v0, 1  ;;  %v193_v12 = vadd.f32 %v192_v4, %v191_v57  ;;  %v167_v62 = vrot.slane %v166_v5, 1  ;;  %v202_v2 = vadd.f32 %v201_v7, %v200_v60 }
  0xcb   :  { %v176_v63 = vrot.slane %v175_v6, 1  ;;  %v211_v16 = vadd.f32 %v210_v8, %v209_v61  ;;  %v159_v18 = vadd.f32 %v158_v10, %v157_v1  ;;  %v185_v21 = vrot.slane %v184_v11, 1 }
  0xcc   :  { %v150_v17 = vadd.f32 %v149_v9, %v148_v0  ;;  %v194_v22 = vrot.slane %v193_v12, 1  ;;  %v168_v23 = vadd.f32 %v167_v62, %v166_v5  ;;  %v203_v26 = vrot.slane %v202_v2, 1 }
  0xcd   :  { %v177_v24 = vadd.f32 %v176_v63, %v175_v6  ;;  %v212_v27 = vrot.slane %v211_v16, 1  ;;  %v160_v29 = vadd.f32 %v159_v18, %v153_v14  ;;  %v186_v30 = vadd.f32 %v185_v21, %v184_v11 }
  0xce   :  { %v151_v28 = vadd.f32 %v150_v17, %v144_v13  ;;  %v195_v32 = vadd.f32 %v194_v22, %v193_v12  ;;  %v169_v33 = vadd.f32 %v168_v23, %v162_v19  ;;  %v204_v37 = vadd.f32 %v203_v26, %v202_v2 }
  0xcf   :  { %v178_v34 = vadd.f32 %v177_v24, %v171_v20  ;;  %v213_v40 = vadd.f32 %v212_v27, %v211_v16  ;;  %v187_v41 = vadd.f32 %v186_v30, %v180_v25  ;;  %v217_v43 = vrot.slane %v674_v44, 4  ;;  %161 = vst [vmem:[#allocation2 + $0x1] sm:$0x1] %v160_v29 }
  0xd0   :  { %152 = vst [vmem:[#allocation2] sm:$0x1] %v151_v28  ;;  %v226_v15 = vrot.slane %v675_v45, 4  ;;  %v196_v35 = vadd.f32 %v195_v32, %v189_v31  ;;  %v205_v38 = vadd.f32 %v204_v37, %v198_v36 }
  0xd1   :  { %170 = vst [vmem:[#allocation2 + $0x2] sm:$0x1] %v169_v33  ;;  %v218_v39 = vadd.f32 %v217_v43, %v674_v44  ;;  %v214_v47 = vadd.f32 %v213_v40, %v207_v42 }
  0xd2   :  { %v227_v46 = vadd.f32 %v226_v15, %v675_v45  ;;  %179 = vst [vmem:[#allocation2 + $0x3] sm:$0x1] %v178_v34 }
  0xd3   :  { %188 = vst [vmem:[#allocation2 + $0x4] sm:$0x1] %v187_v41  ;;  %v219_v48 = vrot.slane %v218_v39, 2 }
  0xd4   :  { %v228_v49 = vrot.slane %v227_v46, 2  ;;  %197 = vst [vmem:[#allocation2 + $0x5] sm:$0x1] %v196_v35 }
  0xd5   :  { %206 = vst [vmem:[#allocation2 + $0x6] sm:$0x1] %v205_v38  ;;  %v220_v50 = vadd.f32 %v219_v48, %v218_v39 }
  0xd6   :  { %v229_v51 = vadd.f32 %v228_v49, %v227_v46  ;;  %215 = vst [vmem:[#allocation2 + $0x7] sm:$0x1] %v214_v47 }
  0xd7   :  { %v221_v52 = vrot.slane %v220_v50, 1 }
  0xd8   :  { %v230_v53 = vrot.slane %v229_v51, 1 }
  0xd9   :  { %v222_v44 = vadd.f32 %v221_v52, %v220_v50 }
  0xda   :  { %v231_v45 = vadd.f32 %v230_v53, %v229_v51 }
  0xdb   :  { %v223_v56 = vadd.f32 %v222_v44, %v216_v54 }
  0xdc   :  { %v232_v57 = vadd.f32 %v231_v45, %v225_v55 }
  0xdd   :  { %224 = vst [vmem:[#allocation2 + $0x8] sm:$0x1] %v223_v56 }
  0xde   :  { %233 = vst [vmem:[#allocation2 + $0x9] sm:$0x1] %v232_v57 }
  0xdf   :  { %246 = dma.vmem_to_hbm [thread:$0]  %s239_s19, 256, %s241_s22, [#allocation3], %s513_s23, %s513_s23, %s514_s24  }
  0xe0   :  { %461 = dma.done.wait [#allocation3], 256  }
  0xe1   :  { %462 = vsyncadd [#allocation3], 4294967040 }
  0xe2   :  { %251 = vsyncpa [#allocation3], 1 }

</bundles_post_ra>
